<compile_context>
chip_gen: v7x
topology: tpu7x:2x2x1
jax: 0.10.0
libtpu: 0.0.40
codegen_flags: <defaults>
</compile_context>

<pallas_src>
import math

import jax
import jax.numpy as jnp
from jax.experimental import pallas as pl
from jax.experimental.pallas import tpu as pltpu  # noqa: F401  (TPU backend assumed)

# ---------------- small config (stand-in for args / BertConfig) ----------------
VOCAB = 100
MAX_POS = 64
HIDDEN = 32            # BERT hidden size == args.input_size
N_HEADS = 4
HEAD_DIM = HIDDEN // N_HEADS
INTER = 64
N_LAYERS = 2
LSTM_H = 32            # args.hidden_size
FEAT = 2 * LSTM_H      # bi-LSTM feature size (input of A_d / Classifier)
K_AMP = 2              # args.k (amplifier iterations)
PAD_ID = 0             # BERT pad token id
LN_EPS = 1e-12
N_CAND = 4             # candidate sentences
SEQ = 8                # tokens per candidate


def _layernorm(x, g, b, eps=LN_EPS):
    mu = jnp.mean(x, axis=-1, keepdims=True)
    var = jnp.mean((x - mu) ** 2, axis=-1, keepdims=True)
    return (x - mu) * jax.lax.rsqrt(var + eps) * g + b


def _sigmoid(x):
    return 1.0 / (1.0 + jnp.exp(-x))


# ---------------- the single fused kernel ----------------
def fused_sort_model_kernel(*refs):
    (emb_ref, bias_ref, hpat_ref, pool_ref, eg_ref, eb_ref) = refs[:6]
    idx = 6
    layer_refs = []
    for _ in range(N_LAYERS):
        layer_refs.append(refs[idx:idx + 12])
        idx += 12
    (wih_f, whh_f, bl_f, wih_b, whh_b, bl_b) = refs[idx:idx + 6]; idx += 6
    (adw_ref, adb_ref, clw_ref, clb_ref) = refs[idx:idx + 4]; idx += 4
    out_ref = refs[idx]

    f32 = jnp.float32
    ns, _ = emb_ref.shape                 # N_CAND * SEQ tokens packed on sublanes
    n_cand = pool_ref.shape[0]

    head_pat = hpat_ref[...]              # (N_HEADS*ns, H)  0/1 head-lane pattern
    attn_bias = bias_ref[...]             # (N_HEADS*ns, ns) padding + block-diag bias
    scale = 1.0 / math.sqrt(HEAD_DIM)

    # ---- BERT embeddings LayerNorm (== hidden_states[0]) ----
    h0 = _layernorm(emb_ref[...], eg_ref[...], eb_ref[...])          # (ns, H)
    x = h0

    # ---- encoder layers (all candidates at once; heads stacked on sublanes) ----
    for (w_qkv, b_qkv, w_ao, b_ao, ln1g, ln1b,
         w_ff1, b_ff1, w_ff2, b_ff2, ln2g, ln2b) in layer_refs:
        qkv = jnp.dot(x, w_qkv[...], preferred_element_type=f32) + b_qkv[...]   # (ns, 3H)
        q = qkv[:, :HIDDEN] * scale
        k = qkv[:, HIDDEN:2 * HIDDEN]
        v = qkv[:, 2 * HIDDEN:]

        # replicate Q over heads (sublane axis) and zero other heads' lanes -> one matmul
        q_rep = jnp.concatenate([q] * N_HEADS, axis=0) * head_pat               # (NH*ns, H)
        s = jax.lax.dot_general(q_rep, k, (((1,), (1,)), ((), ())),
                                preferred_element_type=f32) + attn_bias         # (NH*ns, ns)
        s = s - jnp.max(s, axis=-1, keepdims=True)
        p = jnp.exp(s)
        p = p * pl.reciprocal(jnp.sum(p, axis=-1, keepdims=True), approx=True)

        # one context matmul for all heads, then per-head lane selection + block sum
        ctx_full = jnp.dot(p, v, preferred_element_type=f32) * head_pat         # (NH*ns, H)
        ctx = ctx_full[0:ns, :]
        for h in range(1, N_HEADS):
            ctx = ctx + ctx_full[h * ns:(h + 1) * ns, :]                        # (ns, H)

        attn = jnp.dot(ctx, w_ao[...], preferred_element_type=f32) + b_ao[...]
        h1 = _layernorm(x + attn, ln1g[...], ln1b[...])

        ff = jnp.dot(h1, w_ff1[...], preferred_element_type=f32) + b_ff1[...]
        # TODO(synk): HF BERT uses exact erf GELU; tanh approximation is used here.
        ff = jax.nn.gelu(ff, approximate=True)
        ff = jnp.dot(ff, w_ff2[...], preferred_element_type=f32) + b_ff2[...]
        x = _layernorm(h1 + ff, ln2g[...], ln2b[...])

    # ---- POOLING == 'first_last_avg': (hidden_states[0] + hidden_states[-1]).mean(dim=1)
    cand = jnp.dot(pool_ref[...], h0 + x, preferred_element_type=f32)           # (n_cand, H)

    # ---- MogLSTM forward == plain bidirectional LSTM over candidates (mogrify unused) ----
    gx_f = jnp.dot(cand, wih_f[...], preferred_element_type=f32) + bl_f[...]    # (n_cand, 4*LH)
    gx_b = jnp.dot(cand, wih_b[...], preferred_element_type=f32) + bl_b[...]
    whh_f_v = whh_f[...]
    whh_b_v = whh_b[...]

    def row(mat, t):  # lane-safe row selection via a one-hot matmul
        sel = (jax.lax.broadcasted_iota(jnp.int32, (1, n_cand), 1) == t).astype(f32)
        return jnp.dot(sel, mat, preferred_element_type=f32)

    def lstm_step(gx_t, h_prev, c_prev, whh):
        g = gx_t + jnp.dot(h_prev, whh, preferred_element_type=f32)             # (1, 4*LH)
        i_g = _sigmoid(g[:, 0:LSTM_H])
        f_g = _sigmoid(g[:, LSTM_H:2 * LSTM_H])
        c_g = jnp.tanh(g[:, 2 * LSTM_H:3 * LSTM_H])
        o_g = _sigmoid(g[:, 3 * LSTM_H:4 * LSTM_H])
        c_new = f_g * c_prev + i_g * c_g
        return o_g * jnp.tanh(c_new), c_new

    zero = jnp.zeros((1, LSTM_H), f32)
    h_c, c_c = zero, zero
    fwd = []
    for t in range(n_cand):
        h_c, c_c = lstm_step(row(gx_f, t), h_c, c_c, whh_f_v)
        fwd.append(h_c)
    h_c, c_c = zero, zero
    bwd = [None] * n_cand
    for t in range(n_cand - 1, -1, -1):      # reversed input; store in original order
        h_c, c_c = lstm_step(row(gx_b, t), h_c, c_c, whh_b_v)
        bwd[t] = h_c
    feat = jnp.concatenate(
        [jnp.concatenate([fwd[t], bwd[t]], axis=-1) for t in range(n_cand)],
        axis=0)                                                                  # (n_cand, 2*LH)

    # ---- amplifier: h_i = A_d(x_i - mean(other rows of original feat)) + x_i, k times ----
    mean_others = (jnp.sum(feat, axis=0, keepdims=True) - feat) * (1.0 / (n_cand - 1))
    amp = feat
    for _ in range(K_AMP):
        amp = (jnp.dot(amp - mean_others, adw_ref[...], preferred_element_type=f32)
               + adb_ref[...] + amp)

    # ---- classifier: sigmoid(Linear(2H -> 1)) ----
    out_ref[...] = _sigmoid(
        jnp.dot(amp, clw_ref[...], preferred_element_type=f32) + clb_ref[...])   # (n_cand, 1)


# ---------------- parameters (deterministic, synthetic) ----------------
def init_params(key):
    def nrm(k, shape):
        return jax.random.normal(k, shape, jnp.float32) * 0.05

    def ones(n):
        return jnp.ones((1, n), jnp.float32)

    def zeros(n):
        return jnp.zeros((1, n), jnp.float32)

    ks = iter(jax.random.split(key, 32))
    p = {
        "word_emb": nrm(next(ks), (VOCAB, HIDDEN)),
        "pos_emb": nrm(next(ks), (MAX_POS, HIDDEN)),
        "type_emb": nrm(next(ks), (1, HIDDEN)),
        "emb_ln_g": ones(HIDDEN),
        "emb_ln_b": zeros(HIDDEN),
        "layers": [],
    }
    for _ in range(N_LAYERS):
        p["layers"].append((
            nrm(next(ks), (HIDDEN, 3 * HIDDEN)), zeros(3 * HIDDEN),   # fused Wqkv, bqkv
            nrm(next(ks), (HIDDEN, HIDDEN)), zeros(HIDDEN),           # attn out proj
            ones(HIDDEN), zeros(HIDDEN),                              # LN1
            nrm(next(ks), (HIDDEN, INTER)), zeros(INTER),             # FFN in
            nrm(next(ks), (INTER, HIDDEN)), zeros(HIDDEN),            # FFN out
            ones(HIDDEN), zeros(HIDDEN),                              # LN2
        ))
    p["lstm_f"] = (nrm(next(ks), (HIDDEN, 4 * LSTM_H)),
                   nrm(next(ks), (LSTM_H, 4 * LSTM_H)),
                   zeros(4 * LSTM_H))
    p["lstm_b"] = (nrm(next(ks), (HIDDEN, 4 * LSTM_H)),
                   nrm(next(ks), (LSTM_H, 4 * LSTM_H)),
                   zeros(4 * LSTM_H))
    p["ad_w"] = nrm(next(ks), (FEAT, FEAT))
    p["ad_b"] = zeros(FEAT)
    p["cls_w"] = nrm(next(ks), (FEAT, 1))
    p["cls_b"] = jnp.zeros((1, 1), jnp.float32)
    return p


# ---------------- full forward (== sort_model.forward, eval semantics) ----------------
def sort_model_forward(params, sent_input, src_sent_labels=None):
    del src_sent_labels  # accepted for signature parity; unused in the reference forward
    ids = sent_input.reshape(-1, sent_input.shape[-1])              # (N_CAND, SEQ)
    n_cand, seq = ids.shape
    ns = n_cand * seq

    # embedding gathers stay in plain JAX (data-dependent table lookups)
    pos_ids = jnp.arange(seq, dtype=jnp.int32)
    emb = (params["word_emb"][ids]
           + params["pos_emb"][pos_ids][None, :, :]
           + params["type_emb"][0][None, None, :]).reshape(ns, HIDDEN)

    # additive attention bias: key padding + block-diagonal over candidates,
    # already replicated over heads (heads are stacked on the sublane axis in-kernel)
    key_ok = (ids != PAD_ID).reshape(ns)
    cand_of = jnp.arange(ns, dtype=jnp.int32) // seq
    same_cand = cand_of[:, None] == cand_of[None, :]
    bias = jnp.where(same_cand & key_ok[None, :], 0.0, -1e9).astype(jnp.float32)  # (ns, ns)
    bias_rep = jnp.tile(bias, (N_HEADS, 1))                                       # (NH*ns, ns)

    # constant selection matrices (head-lane pattern and sequence-mean pooling matrix)
    lane_head = jnp.arange(HIDDEN, dtype=jnp.int32) // HEAD_DIM
    row_head = jnp.repeat(jnp.arange(N_HEADS, dtype=jnp.int32), ns)
    head_pat = (row_head[:, None] == lane_head[None, :]).astype(jnp.float32)      # (NH*ns, H)
    pool_mat = (cand_of[None, :] ==
                jnp.arange(n_cand, dtype=jnp.int32)[:, None]).astype(jnp.float32) / seq

    flat = [emb, bias_rep, head_pat, pool_mat, params["emb_ln_g"], params["emb_ln_b"]]
    for lyr in params["layers"]:
        flat.extend(lyr)
    flat.extend(params["lstm_f"])
    flat.extend(params["lstm_b"])
    flat.extend([params["ad_w"], params["ad_b"], params["cls_w"], params["cls_b"]])

    # single grid-less pallas_call: every operand is one full block resident in VMEM
    scores = pl.pallas_call(
        fused_sort_model_kernel,
        out_shape=jax.ShapeDtypeStruct((n_cand, 1), jnp.float32),
    )(*flat)
    return scores[:, 0]                                                           # (n_cand,)


if __name__ == "__main__":
    key = jax.random.PRNGKey(0)
    k_param, k_ids = jax.random.split(key)
    params = init_params(k_param)

    sent_input = jax.random.randint(k_ids, (N_CAND, SEQ), 2, VOCAB, dtype=jnp.int32)
    # pad the tails of two candidate sentences
    sent_input = sent_input.at[1, -2:].set(PAD_ID)
    sent_input = sent_input.at[3, -3:].set(PAD_ID)
    src_sent_labels = jnp.zeros((N_CAND,), jnp.int32)   # unused by forward

    fwd = jax.jit(sort_model_forward)
    sent_scores = fwd(params, sent_input, src_sent_labels)
    jax.block_until_ready(sent_scores)

    assert sent_scores.shape == (N_CAND,)
    assert bool(jnp.all(jnp.isfinite(sent_scores)))
    assert bool(jnp.all((sent_scores >= 0.0) & (sent_scores <= 1.0)))
    print("KERNEL_OK")
</pallas_src>

<mosaic_0001>
module attributes {stable_mosaic.version = 11 : i64} {
  func.func @fused_sort_model_kernel(%arg0: memref<32x32xf32, #tpu.memory_space<vmem>>, %arg1: memref<128x32xf32, #tpu.memory_space<vmem>>, %arg2: memref<128x32xf32, #tpu.memory_space<vmem>>, %arg3: memref<4x32xf32, #tpu.memory_space<vmem>>, %arg4: memref<1x32xf32, #tpu.memory_space<vmem>>, %arg5: memref<1x32xf32, #tpu.memory_space<vmem>>, %arg6: memref<32x96xf32, #tpu.memory_space<vmem>>, %arg7: memref<1x96xf32, #tpu.memory_space<vmem>>, %arg8: memref<32x32xf32, #tpu.memory_space<vmem>>, %arg9: memref<1x32xf32, #tpu.memory_space<vmem>>, %arg10: memref<1x32xf32, #tpu.memory_space<vmem>>, %arg11: memref<1x32xf32, #tpu.memory_space<vmem>>, %arg12: memref<32x64xf32, #tpu.memory_space<vmem>>, %arg13: memref<1x64xf32, #tpu.memory_space<vmem>>, %arg14: memref<64x32xf32, #tpu.memory_space<vmem>>, %arg15: memref<1x32xf32, #tpu.memory_space<vmem>>, %arg16: memref<1x32xf32, #tpu.memory_space<vmem>>, %arg17: memref<1x32xf32, #tpu.memory_space<vmem>>, %arg18: memref<32x96xf32, #tpu.memory_space<vmem>>, %arg19: memref<1x96xf32, #tpu.memory_space<vmem>>, %arg20: memref<32x32xf32, #tpu.memory_space<vmem>>, %arg21: memref<1x32xf32, #tpu.memory_space<vmem>>, %arg22: memref<1x32xf32, #tpu.memory_space<vmem>>, %arg23: memref<1x32xf32, #tpu.memory_space<vmem>>, %arg24: memref<32x64xf32, #tpu.memory_space<vmem>>, %arg25: memref<1x64xf32, #tpu.memory_space<vmem>>, %arg26: memref<64x32xf32, #tpu.memory_space<vmem>>, %arg27: memref<1x32xf32, #tpu.memory_space<vmem>>, %arg28: memref<1x32xf32, #tpu.memory_space<vmem>>, %arg29: memref<1x32xf32, #tpu.memory_space<vmem>>, %arg30: memref<32x128xf32, #tpu.memory_space<vmem>>, %arg31: memref<32x128xf32, #tpu.memory_space<vmem>>, %arg32: memref<1x128xf32, #tpu.memory_space<vmem>>, %arg33: memref<32x128xf32, #tpu.memory_space<vmem>>, %arg34: memref<32x128xf32, #tpu.memory_space<vmem>>, %arg35: memref<1x128xf32, #tpu.memory_space<vmem>>, %arg36: memref<64x64xf32, #tpu.memory_space<vmem>>, %arg37: memref<1x64xf32, #tpu.memory_space<vmem>>, %arg38: memref<64x1xf32, #tpu.memory_space<vmem>>, %arg39: memref<1x1xf32, #tpu.memory_space<vmem>>, %arg40: memref<4x1xf32, #tpu.memory_space<vmem>>) attributes {dimension_semantics = [], scalar_prefetch = 0 : i64, scratch_operands = 0 : i64, tpu.core_type = #tpu.core_type<tc>} {
    %c0 = arith.constant 0 : index
    %c0_0 = arith.constant 0 : index
    %0 = vector.load %arg2[%c0, %c0_0] : memref<128x32xf32, #tpu.memory_space<vmem>>, vector<128x32xf32>
    %c0_1 = arith.constant 0 : index
    %c0_2 = arith.constant 0 : index
    %1 = vector.load %arg1[%c0_1, %c0_2] : memref<128x32xf32, #tpu.memory_space<vmem>>, vector<128x32xf32>
    %c0_3 = arith.constant 0 : index
    %c0_4 = arith.constant 0 : index
    %2 = vector.load %arg0[%c0_3, %c0_4] : memref<32x32xf32, #tpu.memory_space<vmem>>, vector<32x32xf32>
    %c0_5 = arith.constant 0 : index
    %c0_6 = arith.constant 0 : index
    %3 = vector.load %arg4[%c0_5, %c0_6] : memref<1x32xf32, #tpu.memory_space<vmem>>, vector<1x32xf32>
    %c0_7 = arith.constant 0 : index
    %c0_8 = arith.constant 0 : index
    %4 = vector.load %arg5[%c0_7, %c0_8] : memref<1x32xf32, #tpu.memory_space<vmem>>, vector<1x32xf32>
    %cst = arith.constant dense<0.000000e+00> : vector<32xf32>
    %5 = vector.multi_reduction <add>, %2, %cst [1] : vector<32x32xf32> to vector<32xf32>
    %6 = vector.shape_cast %5 : vector<32xf32> to vector<32x1xf32>
    %cst_9 = arith.constant 3.200000e+01 : f32
    %7 = vector.broadcast %cst_9 : f32 to vector<32x1xf32>
    %8 = arith.divf %6, %7 : vector<32x1xf32>
    %9 = vector.broadcast %8 : vector<32x1xf32> to vector<32x32xf32>
    %10 = arith.subf %2, %9 : vector<32x32xf32>
    %11 = arith.mulf %10, %10 : vector<32x32xf32>
    %cst_10 = arith.constant dense<0.000000e+00> : vector<32xf32>
    %12 = vector.multi_reduction <add>, %11, %cst_10 [1] : vector<32x32xf32> to vector<32xf32>
    %13 = vector.shape_cast %12 : vector<32xf32> to vector<32x1xf32>
    %cst_11 = arith.constant 3.200000e+01 : f32
    %14 = vector.broadcast %cst_11 : f32 to vector<32x1xf32>
    %15 = arith.divf %13, %14 : vector<32x1xf32>
    %16 = vector.broadcast %8 : vector<32x1xf32> to vector<32x32xf32>
    %17 = arith.subf %2, %16 : vector<32x32xf32>
    %cst_12 = arith.constant 9.99999996E-13 : f32
    %18 = vector.broadcast %cst_12 : f32 to vector<32x1xf32>
    %19 = arith.addf %15, %18 : vector<32x1xf32>
    %20 = math.rsqrt %19 : vector<32x1xf32>
    %21 = vector.broadcast %20 : vector<32x1xf32> to vector<32x32xf32>
    %22 = arith.mulf %17, %21 : vector<32x32xf32>
    %23 = vector.broadcast %3 : vector<1x32xf32> to vector<32x32xf32>
    %24 = arith.mulf %22, %23 : vector<32x32xf32>
    %25 = vector.broadcast %4 : vector<1x32xf32> to vector<32x32xf32>
    %26 = arith.addf %24, %25 : vector<32x32xf32>
    %c0_13 = arith.constant 0 : index
    %c0_14 = arith.constant 0 : index
    %27 = vector.load %arg6[%c0_13, %c0_14] : memref<32x96xf32, #tpu.memory_space<vmem>>, vector<32x96xf32>
    %cst_15 = arith.constant dense<0.000000e+00> : vector<32x96xf32>
    %28 = tpu.matmul %26, %27, %cst_15 {dimension_numbers = #tpu.dot_dimension_numbers<[1], [0], [0], [1], [0, 0, 1, 1], [], []>} : vector<32x32xf32>, vector<32x96xf32>, vector<32x96xf32> -> vector<32x96xf32>
    %c0_16 = arith.constant 0 : index
    %c0_17 = arith.constant 0 : index
    %29 = vector.load %arg7[%c0_16, %c0_17] : memref<1x96xf32, #tpu.memory_space<vmem>>, vector<1x96xf32>
    %30 = vector.broadcast %29 : vector<1x96xf32> to vector<32x96xf32>
    %31 = arith.addf %28, %30 : vector<32x96xf32>
    %32 = vector.extract_strided_slice %31 {offsets = [0, 0], sizes = [32, 32], strides = [1, 1]} : vector<32x96xf32> to vector<32x32xf32>
    %cst_18 = arith.constant 0.353553385 : f32
    %33 = vector.broadcast %cst_18 : f32 to vector<32x32xf32>
    %34 = arith.mulf %32, %33 : vector<32x32xf32>
    %35 = vector.extract_strided_slice %31 {offsets = [0, 32], sizes = [32, 32], strides = [1, 1]} : vector<32x96xf32> to vector<32x32xf32>
    %36 = vector.extract_strided_slice %31 {offsets = [0, 64], sizes = [32, 32], strides = [1, 1]} : vector<32x96xf32> to vector<32x32xf32>
    %37 = tpu.concatenate %34, %34, %34, %34 in 0 : vector<32x32xf32>, vector<32x32xf32>, vector<32x32xf32>, vector<32x32xf32> -> vector<128x32xf32>
    %38 = arith.mulf %37, %0 : vector<128x32xf32>
    %cst_19 = arith.constant dense<0.000000e+00> : vector<128x32xf32>
    %39 = tpu.matmul %38, %35, %cst_19 {dimension_numbers = #tpu.dot_dimension_numbers<[1], [1], [0], [0], [0, 0, 1, 0], [], []>} : vector<128x32xf32>, vector<32x32xf32>, vector<128x32xf32> -> vector<128x32xf32>
    %40 = arith.addf %39, %1 : vector<128x32xf32>
    %cst_20 = arith.constant dense<0xFF800000> : vector<128xf32>
    %41 = vector.multi_reduction <maximumf>, %40, %cst_20 [1] : vector<128x32xf32> to vector<128xf32>
    %42 = vector.shape_cast %41 : vector<128xf32> to vector<128x1xf32>
    %43 = vector.broadcast %42 : vector<128x1xf32> to vector<128x32xf32>
    %44 = arith.subf %40, %43 : vector<128x32xf32>
    %45 = math.exp %44 : vector<128x32xf32>
    %cst_21 = arith.constant dense<0.000000e+00> : vector<128xf32>
    %46 = vector.multi_reduction <add>, %45, %cst_21 [1] : vector<128x32xf32> to vector<128xf32>
    %47 = vector.shape_cast %46 : vector<128xf32> to vector<128x1xf32>
    %48 = tpu.reciprocal %47 {approx = true} : vector<128x1xf32> -> vector<128x1xf32>
    %49 = vector.broadcast %48 : vector<128x1xf32> to vector<128x32xf32>
    %50 = arith.mulf %45, %49 : vector<128x32xf32>
    %cst_22 = arith.constant dense<0.000000e+00> : vector<128x32xf32>
    %51 = tpu.matmul %50, %36, %cst_22 {dimension_numbers = #tpu.dot_dimension_numbers<[1], [0], [0], [1], [0, 0, 1, 1], [], []>} : vector<128x32xf32>, vector<32x32xf32>, vector<128x32xf32> -> vector<128x32xf32>
    %52 = arith.mulf %51, %0 : vector<128x32xf32>
    %53 = vector.extract_strided_slice %52 {offsets = [0, 0], sizes = [32, 32], strides = [1, 1]} : vector<128x32xf32> to vector<32x32xf32>
    %54 = vector.extract_strided_slice %52 {offsets = [32, 0], sizes = [32, 32], strides = [1, 1]} : vector<128x32xf32> to vector<32x32xf32>
    %55 = arith.addf %53, %54 : vector<32x32xf32>
    %56 = vector.extract_strided_slice %52 {offsets = [64, 0], sizes = [32, 32], strides = [1, 1]} : vector<128x32xf32> to vector<32x32xf32>
    %57 = arith.addf %55, %56 : vector<32x32xf32>
    %58 = vector.extract_strided_slice %52 {offsets = [96, 0], sizes = [32, 32], strides = [1, 1]} : vector<128x32xf32> to vector<32x32xf32>
    %59 = arith.addf %57, %58 : vector<32x32xf32>
    %c0_23 = arith.constant 0 : index
    %c0_24 = arith.constant 0 : index
    %60 = vector.load %arg8[%c0_23, %c0_24] : memref<32x32xf32, #tpu.memory_space<vmem>>, vector<32x32xf32>
    %cst_25 = arith.constant dense<0.000000e+00> : vector<32x32xf32>
    %61 = tpu.matmul %59, %60, %cst_25 {dimension_numbers = #tpu.dot_dimension_numbers<[1], [0], [0], [1], [0, 0, 1, 1], [], []>} : vector<32x32xf32>, vector<32x32xf32>, vector<32x32xf32> -> vector<32x32xf32>
    %c0_26 = arith.constant 0 : index
    %c0_27 = arith.constant 0 : index
    %62 = vector.load %arg9[%c0_26, %c0_27] : memref<1x32xf32, #tpu.memory_space<vmem>>, vector<1x32xf32>
    %63 = vector.broadcast %62 : vector<1x32xf32> to vector<32x32xf32>
    %64 = arith.addf %61, %63 : vector<32x32xf32>
    %65 = arith.addf %26, %64 : vector<32x32xf32>
    %c0_28 = arith.constant 0 : index
    %c0_29 = arith.constant 0 : index
    %66 = vector.load %arg10[%c0_28, %c0_29] : memref<1x32xf32, #tpu.memory_space<vmem>>, vector<1x32xf32>
    %c0_30 = arith.constant 0 : index
    %c0_31 = arith.constant 0 : index
    %67 = vector.load %arg11[%c0_30, %c0_31] : memref<1x32xf32, #tpu.memory_space<vmem>>, vector<1x32xf32>
    %cst_32 = arith.constant dense<0.000000e+00> : vector<32xf32>
    %68 = vector.multi_reduction <add>, %65, %cst_32 [1] : vector<32x32xf32> to vector<32xf32>
    %69 = vector.shape_cast %68 : vector<32xf32> to vector<32x1xf32>
    %cst_33 = arith.constant 3.200000e+01 : f32
    %70 = vector.broadcast %cst_33 : f32 to vector<32x1xf32>
    %71 = arith.divf %69, %70 : vector<32x1xf32>
    %72 = vector.broadcast %71 : vector<32x1xf32> to vector<32x32xf32>
    %73 = arith.subf %65, %72 : vector<32x32xf32>
    %74 = arith.mulf %73, %73 : vector<32x32xf32>
    %cst_34 = arith.constant dense<0.000000e+00> : vector<32xf32>
    %75 = vector.multi_reduction <add>, %74, %cst_34 [1] : vector<32x32xf32> to vector<32xf32>
    %76 = vector.shape_cast %75 : vector<32xf32> to vector<32x1xf32>
    %cst_35 = arith.constant 3.200000e+01 : f32
    %77 = vector.broadcast %cst_35 : f32 to vector<32x1xf32>
    %78 = arith.divf %76, %77 : vector<32x1xf32>
    %79 = vector.broadcast %71 : vector<32x1xf32> to vector<32x32xf32>
    %80 = arith.subf %65, %79 : vector<32x32xf32>
    %cst_36 = arith.constant 9.99999996E-13 : f32
    %81 = vector.broadcast %cst_36 : f32 to vector<32x1xf32>
    %82 = arith.addf %78, %81 : vector<32x1xf32>
    %83 = math.rsqrt %82 : vector<32x1xf32>
    %84 = vector.broadcast %83 : vector<32x1xf32> to vector<32x32xf32>
    %85 = arith.mulf %80, %84 : vector<32x32xf32>
    %86 = vector.broadcast %66 : vector<1x32xf32> to vector<32x32xf32>
    %87 = arith.mulf %85, %86 : vector<32x32xf32>
    %88 = vector.broadcast %67 : vector<1x32xf32> to vector<32x32xf32>
    %89 = arith.addf %87, %88 : vector<32x32xf32>
    %c0_37 = arith.constant 0 : index
    %c0_38 = arith.constant 0 : index
    %90 = vector.load %arg12[%c0_37, %c0_38] : memref<32x64xf32, #tpu.memory_space<vmem>>, vector<32x64xf32>
    %cst_39 = arith.constant dense<0.000000e+00> : vector<32x64xf32>
    %91 = tpu.matmul %89, %90, %cst_39 {dimension_numbers = #tpu.dot_dimension_numbers<[1], [0], [0], [1], [0, 0, 1, 1], [], []>} : vector<32x32xf32>, vector<32x64xf32>, vector<32x64xf32> -> vector<32x64xf32>
    %c0_40 = arith.constant 0 : index
    %c0_41 = arith.constant 0 : index
    %92 = vector.load %arg13[%c0_40, %c0_41] : memref<1x64xf32, #tpu.memory_space<vmem>>, vector<1x64xf32>
    %93 = vector.broadcast %92 : vector<1x64xf32> to vector<32x64xf32>
    %94 = arith.addf %91, %93 : vector<32x64xf32>
    %95 = arith.mulf %94, %94 : vector<32x64xf32>
    %96 = arith.mulf %94, %95 : vector<32x64xf32>
    %cst_42 = arith.constant 4.471500e-02 : f32
    %97 = vector.broadcast %cst_42 : f32 to vector<32x64xf32>
    %98 = arith.mulf %97, %96 : vector<32x64xf32>
    %99 = arith.addf %94, %98 : vector<32x64xf32>
    %cst_43 = arith.constant 0.797884583 : f32
    %100 = vector.broadcast %cst_43 : f32 to vector<32x64xf32>
    %101 = arith.mulf %100, %99 : vector<32x64xf32>
    %102 = math.tanh %101 : vector<32x64xf32>
    %cst_44 = arith.constant 1.000000e+00 : f32
    %103 = vector.broadcast %cst_44 : f32 to vector<32x64xf32>
    %104 = arith.addf %103, %102 : vector<32x64xf32>
    %cst_45 = arith.constant 5.000000e-01 : f32
    %105 = vector.broadcast %cst_45 : f32 to vector<32x64xf32>
    %106 = arith.mulf %105, %104 : vector<32x64xf32>
    %107 = arith.mulf %94, %106 : vector<32x64xf32>
    %c0_46 = arith.constant 0 : index
    %c0_47 = arith.constant 0 : index
    %108 = vector.load %arg14[%c0_46, %c0_47] : memref<64x32xf32, #tpu.memory_space<vmem>>, vector<64x32xf32>
    %cst_48 = arith.constant dense<0.000000e+00> : vector<32x32xf32>
    %109 = tpu.matmul %107, %108, %cst_48 {dimension_numbers = #tpu.dot_dimension_numbers<[1], [0], [0], [1], [0, 0, 1, 1], [], []>} : vector<32x64xf32>, vector<64x32xf32>, vector<32x32xf32> -> vector<32x32xf32>
    %c0_49 = arith.constant 0 : index
    %c0_50 = arith.constant 0 : index
    %110 = vector.load %arg15[%c0_49, %c0_50] : memref<1x32xf32, #tpu.memory_space<vmem>>, vector<1x32xf32>
    %111 = vector.broadcast %110 : vector<1x32xf32> to vector<32x32xf32>
    %112 = arith.addf %109, %111 : vector<32x32xf32>
    %113 = arith.addf %89, %112 : vector<32x32xf32>
    %c0_51 = arith.constant 0 : index
    %c0_52 = arith.constant 0 : index
    %114 = vector.load %arg16[%c0_51, %c0_52] : memref<1x32xf32, #tpu.memory_space<vmem>>, vector<1x32xf32>
    %c0_53 = arith.constant 0 : index
    %c0_54 = arith.constant 0 : index
    %115 = vector.load %arg17[%c0_53, %c0_54] : memref<1x32xf32, #tpu.memory_space<vmem>>, vector<1x32xf32>
    %cst_55 = arith.constant dense<0.000000e+00> : vector<32xf32>
    %116 = vector.multi_reduction <add>, %113, %cst_55 [1] : vector<32x32xf32> to vector<32xf32>
    %117 = vector.shape_cast %116 : vector<32xf32> to vector<32x1xf32>
    %cst_56 = arith.constant 3.200000e+01 : f32
    %118 = vector.broadcast %cst_56 : f32 to vector<32x1xf32>
    %119 = arith.divf %117, %118 : vector<32x1xf32>
    %120 = vector.broadcast %119 : vector<32x1xf32> to vector<32x32xf32>
    %121 = arith.subf %113, %120 : vector<32x32xf32>
    %122 = arith.mulf %121, %121 : vector<32x32xf32>
    %cst_57 = arith.constant dense<0.000000e+00> : vector<32xf32>
    %123 = vector.multi_reduction <add>, %122, %cst_57 [1] : vector<32x32xf32> to vector<32xf32>
    %124 = vector.shape_cast %123 : vector<32xf32> to vector<32x1xf32>
    %cst_58 = arith.constant 3.200000e+01 : f32
    %125 = vector.broadcast %cst_58 : f32 to vector<32x1xf32>
    %126 = arith.divf %124, %125 : vector<32x1xf32>
    %127 = vector.broadcast %119 : vector<32x1xf32> to vector<32x32xf32>
    %128 = arith.subf %113, %127 : vector<32x32xf32>
    %cst_59 = arith.constant 9.99999996E-13 : f32
    %129 = vector.broadcast %cst_59 : f32 to vector<32x1xf32>
    %130 = arith.addf %126, %129 : vector<32x1xf32>
    %131 = math.rsqrt %130 : vector<32x1xf32>
    %132 = vector.broadcast %131 : vector<32x1xf32> to vector<32x32xf32>
    %133 = arith.mulf %128, %132 : vector<32x32xf32>
    %134 = vector.broadcast %114 : vector<1x32xf32> to vector<32x32xf32>
    %135 = arith.mulf %133, %134 : vector<32x32xf32>
    %136 = vector.broadcast %115 : vector<1x32xf32> to vector<32x32xf32>
    %137 = arith.addf %135, %136 : vector<32x32xf32>
    %c0_60 = arith.constant 0 : index
    %c0_61 = arith.constant 0 : index
    %138 = vector.load %arg18[%c0_60, %c0_61] : memref<32x96xf32, #tpu.memory_space<vmem>>, vector<32x96xf32>
    %cst_62 = arith.constant dense<0.000000e+00> : vector<32x96xf32>
    %139 = tpu.matmul %137, %138, %cst_62 {dimension_numbers = #tpu.dot_dimension_numbers<[1], [0], [0], [1], [0, 0, 1, 1], [], []>} : vector<32x32xf32>, vector<32x96xf32>, vector<32x96xf32> -> vector<32x96xf32>
    %c0_63 = arith.constant 0 : index
    %c0_64 = arith.constant 0 : index
    %140 = vector.load %arg19[%c0_63, %c0_64] : memref<1x96xf32, #tpu.memory_space<vmem>>, vector<1x96xf32>
    %141 = vector.broadcast %140 : vector<1x96xf32> to vector<32x96xf32>
    %142 = arith.addf %139, %141 : vector<32x96xf32>
    %143 = vector.extract_strided_slice %142 {offsets = [0, 0], sizes = [32, 32], strides = [1, 1]} : vector<32x96xf32> to vector<32x32xf32>
    %cst_65 = arith.constant 0.353553385 : f32
    %144 = vector.broadcast %cst_65 : f32 to vector<32x32xf32>
    %145 = arith.mulf %143, %144 : vector<32x32xf32>
    %146 = vector.extract_strided_slice %142 {offsets = [0, 32], sizes = [32, 32], strides = [1, 1]} : vector<32x96xf32> to vector<32x32xf32>
    %147 = vector.extract_strided_slice %142 {offsets = [0, 64], sizes = [32, 32], strides = [1, 1]} : vector<32x96xf32> to vector<32x32xf32>
    %148 = tpu.concatenate %145, %145, %145, %145 in 0 : vector<32x32xf32>, vector<32x32xf32>, vector<32x32xf32>, vector<32x32xf32> -> vector<128x32xf32>
    %149 = arith.mulf %148, %0 : vector<128x32xf32>
    %cst_66 = arith.constant dense<0.000000e+00> : vector<128x32xf32>
    %150 = tpu.matmul %149, %146, %cst_66 {dimension_numbers = #tpu.dot_dimension_numbers<[1], [1], [0], [0], [0, 0, 1, 0], [], []>} : vector<128x32xf32>, vector<32x32xf32>, vector<128x32xf32> -> vector<128x32xf32>
    %151 = arith.addf %150, %1 : vector<128x32xf32>
    %cst_67 = arith.constant dense<0xFF800000> : vector<128xf32>
    %152 = vector.multi_reduction <maximumf>, %151, %cst_67 [1] : vector<128x32xf32> to vector<128xf32>
    %153 = vector.shape_cast %152 : vector<128xf32> to vector<128x1xf32>
    %154 = vector.broadcast %153 : vector<128x1xf32> to vector<128x32xf32>
    %155 = arith.subf %151, %154 : vector<128x32xf32>
    %156 = math.exp %155 : vector<128x32xf32>
    %cst_68 = arith.constant dense<0.000000e+00> : vector<128xf32>
    %157 = vector.multi_reduction <add>, %156, %cst_68 [1] : vector<128x32xf32> to vector<128xf32>
    %158 = vector.shape_cast %157 : vector<128xf32> to vector<128x1xf32>
    %159 = tpu.reciprocal %158 {approx = true} : vector<128x1xf32> -> vector<128x1xf32>
    %160 = vector.broadcast %159 : vector<128x1xf32> to vector<128x32xf32>
    %161 = arith.mulf %156, %160 : vector<128x32xf32>
    %cst_69 = arith.constant dense<0.000000e+00> : vector<128x32xf32>
    %162 = tpu.matmul %161, %147, %cst_69 {dimension_numbers = #tpu.dot_dimension_numbers<[1], [0], [0], [1], [0, 0, 1, 1], [], []>} : vector<128x32xf32>, vector<32x32xf32>, vector<128x32xf32> -> vector<128x32xf32>
    %163 = arith.mulf %162, %0 : vector<128x32xf32>
    %164 = vector.extract_strided_slice %163 {offsets = [0, 0], sizes = [32, 32], strides = [1, 1]} : vector<128x32xf32> to vector<32x32xf32>
    %165 = vector.extract_strided_slice %163 {offsets = [32, 0], sizes = [32, 32], strides = [1, 1]} : vector<128x32xf32> to vector<32x32xf32>
    %166 = arith.addf %164, %165 : vector<32x32xf32>
    %167 = vector.extract_strided_slice %163 {offsets = [64, 0], sizes = [32, 32], strides = [1, 1]} : vector<128x32xf32> to vector<32x32xf32>
    %168 = arith.addf %166, %167 : vector<32x32xf32>
    %169 = vector.extract_strided_slice %163 {offsets = [96, 0], sizes = [32, 32], strides = [1, 1]} : vector<128x32xf32> to vector<32x32xf32>
    %170 = arith.addf %168, %169 : vector<32x32xf32>
    %c0_70 = arith.constant 0 : index
    %c0_71 = arith.constant 0 : index
    %171 = vector.load %arg20[%c0_70, %c0_71] : memref<32x32xf32, #tpu.memory_space<vmem>>, vector<32x32xf32>
    %cst_72 = arith.constant dense<0.000000e+00> : vector<32x32xf32>
    %172 = tpu.matmul %170, %171, %cst_72 {dimension_numbers = #tpu.dot_dimension_numbers<[1], [0], [0], [1], [0, 0, 1, 1], [], []>} : vector<32x32xf32>, vector<32x32xf32>, vector<32x32xf32> -> vector<32x32xf32>
    %c0_73 = arith.constant 0 : index
    %c0_74 = arith.constant 0 : index
    %173 = vector.load %arg21[%c0_73, %c0_74] : memref<1x32xf32, #tpu.memory_space<vmem>>, vector<1x32xf32>
    %174 = vector.broadcast %173 : vector<1x32xf32> to vector<32x32xf32>
    %175 = arith.addf %172, %174 : vector<32x32xf32>
    %176 = arith.addf %137, %175 : vector<32x32xf32>
    %c0_75 = arith.constant 0 : index
    %c0_76 = arith.constant 0 : index
    %177 = vector.load %arg22[%c0_75, %c0_76] : memref<1x32xf32, #tpu.memory_space<vmem>>, vector<1x32xf32>
    %c0_77 = arith.constant 0 : index
    %c0_78 = arith.constant 0 : index
    %178 = vector.load %arg23[%c0_77, %c0_78] : memref<1x32xf32, #tpu.memory_space<vmem>>, vector<1x32xf32>
    %cst_79 = arith.constant dense<0.000000e+00> : vector<32xf32>
    %179 = vector.multi_reduction <add>, %176, %cst_79 [1] : vector<32x32xf32> to vector<32xf32>
    %180 = vector.shape_cast %179 : vector<32xf32> to vector<32x1xf32>
    %cst_80 = arith.constant 3.200000e+01 : f32
    %181 = vector.broadcast %cst_80 : f32 to vector<32x1xf32>
    %182 = arith.divf %180, %181 : vector<32x1xf32>
    %183 = vector.broadcast %182 : vector<32x1xf32> to vector<32x32xf32>
    %184 = arith.subf %176, %183 : vector<32x32xf32>
    %185 = arith.mulf %184, %184 : vector<32x32xf32>
    %cst_81 = arith.constant dense<0.000000e+00> : vector<32xf32>
    %186 = vector.multi_reduction <add>, %185, %cst_81 [1] : vector<32x32xf32> to vector<32xf32>
    %187 = vector.shape_cast %186 : vector<32xf32> to vector<32x1xf32>
    %cst_82 = arith.constant 3.200000e+01 : f32
    %188 = vector.broadcast %cst_82 : f32 to vector<32x1xf32>
    %189 = arith.divf %187, %188 : vector<32x1xf32>
    %190 = vector.broadcast %182 : vector<32x1xf32> to vector<32x32xf32>
    %191 = arith.subf %176, %190 : vector<32x32xf32>
    %cst_83 = arith.constant 9.99999996E-13 : f32
    %192 = vector.broadcast %cst_83 : f32 to vector<32x1xf32>
    %193 = arith.addf %189, %192 : vector<32x1xf32>
    %194 = math.rsqrt %193 : vector<32x1xf32>
    %195 = vector.broadcast %194 : vector<32x1xf32> to vector<32x32xf32>
    %196 = arith.mulf %191, %195 : vector<32x32xf32>
    %197 = vector.broadcast %177 : vector<1x32xf32> to vector<32x32xf32>
    %198 = arith.mulf %196, %197 : vector<32x32xf32>
    %199 = vector.broadcast %178 : vector<1x32xf32> to vector<32x32xf32>
    %200 = arith.addf %198, %199 : vector<32x32xf32>
    %c0_84 = arith.constant 0 : index
    %c0_85 = arith.constant 0 : index
    %201 = vector.load %arg24[%c0_84, %c0_85] : memref<32x64xf32, #tpu.memory_space<vmem>>, vector<32x64xf32>
    %cst_86 = arith.constant dense<0.000000e+00> : vector<32x64xf32>
    %202 = tpu.matmul %200, %201, %cst_86 {dimension_numbers = #tpu.dot_dimension_numbers<[1], [0], [0], [1], [0, 0, 1, 1], [], []>} : vector<32x32xf32>, vector<32x64xf32>, vector<32x64xf32> -> vector<32x64xf32>
    %c0_87 = arith.constant 0 : index
    %c0_88 = arith.constant 0 : index
    %203 = vector.load %arg25[%c0_87, %c0_88] : memref<1x64xf32, #tpu.memory_space<vmem>>, vector<1x64xf32>
    %204 = vector.broadcast %203 : vector<1x64xf32> to vector<32x64xf32>
    %205 = arith.addf %202, %204 : vector<32x64xf32>
    %206 = arith.mulf %205, %205 : vector<32x64xf32>
    %207 = arith.mulf %205, %206 : vector<32x64xf32>
    %cst_89 = arith.constant 4.471500e-02 : f32
    %208 = vector.broadcast %cst_89 : f32 to vector<32x64xf32>
    %209 = arith.mulf %208, %207 : vector<32x64xf32>
    %210 = arith.addf %205, %209 : vector<32x64xf32>
    %cst_90 = arith.constant 0.797884583 : f32
    %211 = vector.broadcast %cst_90 : f32 to vector<32x64xf32>
    %212 = arith.mulf %211, %210 : vector<32x64xf32>
    %213 = math.tanh %212 : vector<32x64xf32>
    %cst_91 = arith.constant 1.000000e+00 : f32
    %214 = vector.broadcast %cst_91 : f32 to vector<32x64xf32>
    %215 = arith.addf %214, %213 : vector<32x64xf32>
    %cst_92 = arith.constant 5.000000e-01 : f32
    %216 = vector.broadcast %cst_92 : f32 to vector<32x64xf32>
    %217 = arith.mulf %216, %215 : vector<32x64xf32>
    %218 = arith.mulf %205, %217 : vector<32x64xf32>
    %c0_93 = arith.constant 0 : index
    %c0_94 = arith.constant 0 : index
    %219 = vector.load %arg26[%c0_93, %c0_94] : memref<64x32xf32, #tpu.memory_space<vmem>>, vector<64x32xf32>
    %cst_95 = arith.constant dense<0.000000e+00> : vector<32x32xf32>
    %220 = tpu.matmul %218, %219, %cst_95 {dimension_numbers = #tpu.dot_dimension_numbers<[1], [0], [0], [1], [0, 0, 1, 1], [], []>} : vector<32x64xf32>, vector<64x32xf32>, vector<32x32xf32> -> vector<32x32xf32>
    %c0_96 = arith.constant 0 : index
    %c0_97 = arith.constant 0 : index
    %221 = vector.load %arg27[%c0_96, %c0_97] : memref<1x32xf32, #tpu.memory_space<vmem>>, vector<1x32xf32>
    %222 = vector.broadcast %221 : vector<1x32xf32> to vector<32x32xf32>
    %223 = arith.addf %220, %222 : vector<32x32xf32>
    %224 = arith.addf %200, %223 : vector<32x32xf32>
    %c0_98 = arith.constant 0 : index
    %c0_99 = arith.constant 0 : index
    %225 = vector.load %arg28[%c0_98, %c0_99] : memref<1x32xf32, #tpu.memory_space<vmem>>, vector<1x32xf32>
    %c0_100 = arith.constant 0 : index
    %c0_101 = arith.constant 0 : index
    %226 = vector.load %arg29[%c0_100, %c0_101] : memref<1x32xf32, #tpu.memory_space<vmem>>, vector<1x32xf32>
    %cst_102 = arith.constant dense<0.000000e+00> : vector<32xf32>
    %227 = vector.multi_reduction <add>, %224, %cst_102 [1] : vector<32x32xf32> to vector<32xf32>
    %228 = vector.shape_cast %227 : vector<32xf32> to vector<32x1xf32>
    %cst_103 = arith.constant 3.200000e+01 : f32
    %229 = vector.broadcast %cst_103 : f32 to vector<32x1xf32>
    %230 = arith.divf %228, %229 : vector<32x1xf32>
    %231 = vector.broadcast %230 : vector<32x1xf32> to vector<32x32xf32>
    %232 = arith.subf %224, %231 : vector<32x32xf32>
    %233 = arith.mulf %232, %232 : vector<32x32xf32>
    %cst_104 = arith.constant dense<0.000000e+00> : vector<32xf32>
    %234 = vector.multi_reduction <add>, %233, %cst_104 [1] : vector<32x32xf32> to vector<32xf32>
    %235 = vector.shape_cast %234 : vector<32xf32> to vector<32x1xf32>
    %cst_105 = arith.constant 3.200000e+01 : f32
    %236 = vector.broadcast %cst_105 : f32 to vector<32x1xf32>
    %237 = arith.divf %235, %236 : vector<32x1xf32>
    %238 = vector.broadcast %230 : vector<32x1xf32> to vector<32x32xf32>
    %239 = arith.subf %224, %238 : vector<32x32xf32>
    %cst_106 = arith.constant 9.99999996E-13 : f32
    %240 = vector.broadcast %cst_106 : f32 to vector<32x1xf32>
    %241 = arith.addf %237, %240 : vector<32x1xf32>
    %242 = math.rsqrt %241 : vector<32x1xf32>
    %243 = vector.broadcast %242 : vector<32x1xf32> to vector<32x32xf32>
    %244 = arith.mulf %239, %243 : vector<32x32xf32>
    %245 = vector.broadcast %225 : vector<1x32xf32> to vector<32x32xf32>
    %246 = arith.mulf %244, %245 : vector<32x32xf32>
    %247 = vector.broadcast %226 : vector<1x32xf32> to vector<32x32xf32>
    %248 = arith.addf %246, %247 : vector<32x32xf32>
    %c0_107 = arith.constant 0 : index
    %c0_108 = arith.constant 0 : index
    %249 = vector.load %arg3[%c0_107, %c0_108] : memref<4x32xf32, #tpu.memory_space<vmem>>, vector<4x32xf32>
    %250 = arith.addf %26, %248 : vector<32x32xf32>
    %cst_109 = arith.constant dense<0.000000e+00> : vector<4x32xf32>
    %251 = tpu.matmul %249, %250, %cst_109 {dimension_numbers = #tpu.dot_dimension_numbers<[1], [0], [0], [1], [0, 0, 1, 1], [], []>} : vector<4x32xf32>, vector<32x32xf32>, vector<4x32xf32> -> vector<4x32xf32>
    %c0_110 = arith.constant 0 : index
    %c0_111 = arith.constant 0 : index
    %252 = vector.load %arg30[%c0_110, %c0_111] : memref<32x128xf32, #tpu.memory_space<vmem>>, vector<32x128xf32>
    %cst_112 = arith.constant dense<0.000000e+00> : vector<4x128xf32>
    %253 = tpu.matmul %251, %252, %cst_112 {dimension_numbers = #tpu.dot_dimension_numbers<[1], [0], [0], [1], [0, 0, 1, 1], [], []>} : vector<4x32xf32>, vector<32x128xf32>, vector<4x128xf32> -> vector<4x128xf32>
    %c0_113 = arith.constant 0 : index
    %c0_114 = arith.constant 0 : index
    %254 = vector.load %arg32[%c0_113, %c0_114] : memref<1x128xf32, #tpu.memory_space<vmem>>, vector<1x128xf32>
    %255 = vector.broadcast %254 : vector<1x128xf32> to vector<4x128xf32>
    %256 = arith.addf %253, %255 : vector<4x128xf32>
    %c0_115 = arith.constant 0 : index
    %c0_116 = arith.constant 0 : index
    %257 = vector.load %arg33[%c0_115, %c0_116] : memref<32x128xf32, #tpu.memory_space<vmem>>, vector<32x128xf32>
    %cst_117 = arith.constant dense<0.000000e+00> : vector<4x128xf32>
    %258 = tpu.matmul %251, %257, %cst_117 {dimension_numbers = #tpu.dot_dimension_numbers<[1], [0], [0], [1], [0, 0, 1, 1], [], []>} : vector<4x32xf32>, vector<32x128xf32>, vector<4x128xf32> -> vector<4x128xf32>
    %c0_118 = arith.constant 0 : index
    %c0_119 = arith.constant 0 : index
    %259 = vector.load %arg35[%c0_118, %c0_119] : memref<1x128xf32, #tpu.memory_space<vmem>>, vector<1x128xf32>
    %260 = vector.broadcast %259 : vector<1x128xf32> to vector<4x128xf32>
    %261 = arith.addf %258, %260 : vector<4x128xf32>
    %c0_120 = arith.constant 0 : index
    %c0_121 = arith.constant 0 : index
    %262 = vector.load %arg31[%c0_120, %c0_121] : memref<32x128xf32, #tpu.memory_space<vmem>>, vector<32x128xf32>
    %c0_122 = arith.constant 0 : index
    %c0_123 = arith.constant 0 : index
    %263 = vector.load %arg34[%c0_122, %c0_123] : memref<32x128xf32, #tpu.memory_space<vmem>>, vector<32x128xf32>
    %cst_124 = arith.constant 0.000000e+00 : f32
    %264 = vector.broadcast %cst_124 : f32 to vector<1x32xf32>
    %265 = tpu.iota {dimensions = array<i32: 1>} : vector<1x4xi32>
    %c0_i32 = arith.constant 0 : i32
    %266 = vector.broadcast %c0_i32 : i32 to vector<1x4xi32>
    %267 = arith.cmpi eq, %265, %266 : vector<1x4xi32>
    %268 = arith.extui %267 : vector<1x4xi1> to vector<1x4xi32>
    %269 = arith.sitofp %268 : vector<1x4xi32> to vector<1x4xf32>
    %cst_125 = arith.constant dense<0.000000e+00> : vector<1x128xf32>
    %270 = tpu.matmul %269, %256, %cst_125 {dimension_numbers = #tpu.dot_dimension_numbers<[1], [0], [0], [1], [0, 0, 1, 1], [], []>} : vector<1x4xf32>, vector<4x128xf32>, vector<1x128xf32> -> vector<1x128xf32>
    %cst_126 = arith.constant dense<0.000000e+00> : vector<1x128xf32>
    %271 = tpu.matmul %264, %262, %cst_126 {dimension_numbers = #tpu.dot_dimension_numbers<[1], [0], [0], [1], [0, 0, 1, 1], [], []>} : vector<1x32xf32>, vector<32x128xf32>, vector<1x128xf32> -> vector<1x128xf32>
    %272 = arith.addf %270, %271 : vector<1x128xf32>
    %273 = vector.extract_strided_slice %272 {offsets = [0, 0], sizes = [1, 32], strides = [1, 1]} : vector<1x128xf32> to vector<1x32xf32>
    %cst_127 = arith.constant 0.000000e+00 : f32
    %274 = vector.broadcast %cst_127 : f32 to vector<1x32xf32>
    %275 = arith.subf %274, %273 : vector<1x32xf32>
    %276 = math.exp %275 : vector<1x32xf32>
    %cst_128 = arith.constant 1.000000e+00 : f32
    %277 = vector.broadcast %cst_128 : f32 to vector<1x32xf32>
    %278 = arith.addf %277, %276 : vector<1x32xf32>
    %cst_129 = arith.constant 1.000000e+00 : f32
    %279 = vector.broadcast %cst_129 : f32 to vector<1x32xf32>
    %280 = arith.divf %279, %278 : vector<1x32xf32>
    %281 = vector.extract_strided_slice %272 {offsets = [0, 32], sizes = [1, 32], strides = [1, 1]} : vector<1x128xf32> to vector<1x32xf32>
    %cst_130 = arith.constant 0.000000e+00 : f32
    %282 = vector.broadcast %cst_130 : f32 to vector<1x32xf32>
    %283 = arith.subf %282, %281 : vector<1x32xf32>
    %284 = math.exp %283 : vector<1x32xf32>
    %cst_131 = arith.constant 1.000000e+00 : f32
    %285 = vector.broadcast %cst_131 : f32 to vector<1x32xf32>
    %286 = arith.addf %285, %284 : vector<1x32xf32>
    %cst_132 = arith.constant 1.000000e+00 : f32
    %287 = vector.broadcast %cst_132 : f32 to vector<1x32xf32>
    %288 = arith.divf %287, %286 : vector<1x32xf32>
    %289 = vector.extract_strided_slice %272 {offsets = [0, 64], sizes = [1, 32], strides = [1, 1]} : vector<1x128xf32> to vector<1x32xf32>
    %290 = math.tanh %289 : vector<1x32xf32>
    %291 = vector.extract_strided_slice %272 {offsets = [0, 96], sizes = [1, 32], strides = [1, 1]} : vector<1x128xf32> to vector<1x32xf32>
    %cst_133 = arith.constant 0.000000e+00 : f32
    %292 = vector.broadcast %cst_133 : f32 to vector<1x32xf32>
    %293 = arith.subf %292, %291 : vector<1x32xf32>
    %294 = math.exp %293 : vector<1x32xf32>
    %cst_134 = arith.constant 1.000000e+00 : f32
    %295 = vector.broadcast %cst_134 : f32 to vector<1x32xf32>
    %296 = arith.addf %295, %294 : vector<1x32xf32>
    %cst_135 = arith.constant 1.000000e+00 : f32
    %297 = vector.broadcast %cst_135 : f32 to vector<1x32xf32>
    %298 = arith.divf %297, %296 : vector<1x32xf32>
    %299 = arith.mulf %288, %264 : vector<1x32xf32>
    %300 = arith.mulf %280, %290 : vector<1x32xf32>
    %301 = arith.addf %299, %300 : vector<1x32xf32>
    %302 = math.tanh %301 : vector<1x32xf32>
    %303 = arith.mulf %298, %302 : vector<1x32xf32>
    %304 = tpu.iota {dimensions = array<i32: 1>} : vector<1x4xi32>
    %c1_i32 = arith.constant 1 : i32
    %305 = vector.broadcast %c1_i32 : i32 to vector<1x4xi32>
    %306 = arith.cmpi eq, %304, %305 : vector<1x4xi32>
    %307 = arith.extui %306 : vector<1x4xi1> to vector<1x4xi32>
    %308 = arith.sitofp %307 : vector<1x4xi32> to vector<1x4xf32>
    %cst_136 = arith.constant dense<0.000000e+00> : vector<1x128xf32>
    %309 = tpu.matmul %308, %256, %cst_136 {dimension_numbers = #tpu.dot_dimension_numbers<[1], [0], [0], [1], [0, 0, 1, 1], [], []>} : vector<1x4xf32>, vector<4x128xf32>, vector<1x128xf32> -> vector<1x128xf32>
    %cst_137 = arith.constant dense<0.000000e+00> : vector<1x128xf32>
    %310 = tpu.matmul %303, %262, %cst_137 {dimension_numbers = #tpu.dot_dimension_numbers<[1], [0], [0], [1], [0, 0, 1, 1], [], []>} : vector<1x32xf32>, vector<32x128xf32>, vector<1x128xf32> -> vector<1x128xf32>
    %311 = arith.addf %309, %310 : vector<1x128xf32>
    %312 = vector.extract_strided_slice %311 {offsets = [0, 0], sizes = [1, 32], strides = [1, 1]} : vector<1x128xf32> to vector<1x32xf32>
    %cst_138 = arith.constant 0.000000e+00 : f32
    %313 = vector.broadcast %cst_138 : f32 to vector<1x32xf32>
    %314 = arith.subf %313, %312 : vector<1x32xf32>
    %315 = math.exp %314 : vector<1x32xf32>
    %cst_139 = arith.constant 1.000000e+00 : f32
    %316 = vector.broadcast %cst_139 : f32 to vector<1x32xf32>
    %317 = arith.addf %316, %315 : vector<1x32xf32>
    %cst_140 = arith.constant 1.000000e+00 : f32
    %318 = vector.broadcast %cst_140 : f32 to vector<1x32xf32>
    %319 = arith.divf %318, %317 : vector<1x32xf32>
    %320 = vector.extract_strided_slice %311 {offsets = [0, 32], sizes = [1, 32], strides = [1, 1]} : vector<1x128xf32> to vector<1x32xf32>
    %cst_141 = arith.constant 0.000000e+00 : f32
    %321 = vector.broadcast %cst_141 : f32 to vector<1x32xf32>
    %322 = arith.subf %321, %320 : vector<1x32xf32>
    %323 = math.exp %322 : vector<1x32xf32>
    %cst_142 = arith.constant 1.000000e+00 : f32
    %324 = vector.broadcast %cst_142 : f32 to vector<1x32xf32>
    %325 = arith.addf %324, %323 : vector<1x32xf32>
    %cst_143 = arith.constant 1.000000e+00 : f32
    %326 = vector.broadcast %cst_143 : f32 to vector<1x32xf32>
    %327 = arith.divf %326, %325 : vector<1x32xf32>
    %328 = vector.extract_strided_slice %311 {offsets = [0, 64], sizes = [1, 32], strides = [1, 1]} : vector<1x128xf32> to vector<1x32xf32>
    %329 = math.tanh %328 : vector<1x32xf32>
    %330 = vector.extract_strided_slice %311 {offsets = [0, 96], sizes = [1, 32], strides = [1, 1]} : vector<1x128xf32> to vector<1x32xf32>
    %cst_144 = arith.constant 0.000000e+00 : f32
    %331 = vector.broadcast %cst_144 : f32 to vector<1x32xf32>
    %332 = arith.subf %331, %330 : vector<1x32xf32>
    %333 = math.exp %332 : vector<1x32xf32>
    %cst_145 = arith.constant 1.000000e+00 : f32
    %334 = vector.broadcast %cst_145 : f32 to vector<1x32xf32>
    %335 = arith.addf %334, %333 : vector<1x32xf32>
    %cst_146 = arith.constant 1.000000e+00 : f32
    %336 = vector.broadcast %cst_146 : f32 to vector<1x32xf32>
    %337 = arith.divf %336, %335 : vector<1x32xf32>
    %338 = arith.mulf %327, %301 : vector<1x32xf32>
    %339 = arith.mulf %319, %329 : vector<1x32xf32>
    %340 = arith.addf %338, %339 : vector<1x32xf32>
    %341 = math.tanh %340 : vector<1x32xf32>
    %342 = arith.mulf %337, %341 : vector<1x32xf32>
    %343 = tpu.iota {dimensions = array<i32: 1>} : vector<1x4xi32>
    %c2_i32 = arith.constant 2 : i32
    %344 = vector.broadcast %c2_i32 : i32 to vector<1x4xi32>
    %345 = arith.cmpi eq, %343, %344 : vector<1x4xi32>
    %346 = arith.extui %345 : vector<1x4xi1> to vector<1x4xi32>
    %347 = arith.sitofp %346 : vector<1x4xi32> to vector<1x4xf32>
    %cst_147 = arith.constant dense<0.000000e+00> : vector<1x128xf32>
    %348 = tpu.matmul %347, %256, %cst_147 {dimension_numbers = #tpu.dot_dimension_numbers<[1], [0], [0], [1], [0, 0, 1, 1], [], []>} : vector<1x4xf32>, vector<4x128xf32>, vector<1x128xf32> -> vector<1x128xf32>
    %cst_148 = arith.constant dense<0.000000e+00> : vector<1x128xf32>
    %349 = tpu.matmul %342, %262, %cst_148 {dimension_numbers = #tpu.dot_dimension_numbers<[1], [0], [0], [1], [0, 0, 1, 1], [], []>} : vector<1x32xf32>, vector<32x128xf32>, vector<1x128xf32> -> vector<1x128xf32>
    %350 = arith.addf %348, %349 : vector<1x128xf32>
    %351 = vector.extract_strided_slice %350 {offsets = [0, 0], sizes = [1, 32], strides = [1, 1]} : vector<1x128xf32> to vector<1x32xf32>
    %cst_149 = arith.constant 0.000000e+00 : f32
    %352 = vector.broadcast %cst_149 : f32 to vector<1x32xf32>
    %353 = arith.subf %352, %351 : vector<1x32xf32>
    %354 = math.exp %353 : vector<1x32xf32>
    %cst_150 = arith.constant 1.000000e+00 : f32
    %355 = vector.broadcast %cst_150 : f32 to vector<1x32xf32>
    %356 = arith.addf %355, %354 : vector<1x32xf32>
    %cst_151 = arith.constant 1.000000e+00 : f32
    %357 = vector.broadcast %cst_151 : f32 to vector<1x32xf32>
    %358 = arith.divf %357, %356 : vector<1x32xf32>
    %359 = vector.extract_strided_slice %350 {offsets = [0, 32], sizes = [1, 32], strides = [1, 1]} : vector<1x128xf32> to vector<1x32xf32>
    %cst_152 = arith.constant 0.000000e+00 : f32
    %360 = vector.broadcast %cst_152 : f32 to vector<1x32xf32>
    %361 = arith.subf %360, %359 : vector<1x32xf32>
    %362 = math.exp %361 : vector<1x32xf32>
    %cst_153 = arith.constant 1.000000e+00 : f32
    %363 = vector.broadcast %cst_153 : f32 to vector<1x32xf32>
    %364 = arith.addf %363, %362 : vector<1x32xf32>
    %cst_154 = arith.constant 1.000000e+00 : f32
    %365 = vector.broadcast %cst_154 : f32 to vector<1x32xf32>
    %366 = arith.divf %365, %364 : vector<1x32xf32>
    %367 = vector.extract_strided_slice %350 {offsets = [0, 64], sizes = [1, 32], strides = [1, 1]} : vector<1x128xf32> to vector<1x32xf32>
    %368 = math.tanh %367 : vector<1x32xf32>
    %369 = vector.extract_strided_slice %350 {offsets = [0, 96], sizes = [1, 32], strides = [1, 1]} : vector<1x128xf32> to vector<1x32xf32>
    %cst_155 = arith.constant 0.000000e+00 : f32
    %370 = vector.broadcast %cst_155 : f32 to vector<1x32xf32>
    %371 = arith.subf %370, %369 : vector<1x32xf32>
    %372 = math.exp %371 : vector<1x32xf32>
    %cst_156 = arith.constant 1.000000e+00 : f32
    %373 = vector.broadcast %cst_156 : f32 to vector<1x32xf32>
    %374 = arith.addf %373, %372 : vector<1x32xf32>
    %cst_157 = arith.constant 1.000000e+00 : f32
    %375 = vector.broadcast %cst_157 : f32 to vector<1x32xf32>
    %376 = arith.divf %375, %374 : vector<1x32xf32>
    %377 = arith.mulf %366, %340 : vector<1x32xf32>
    %378 = arith.mulf %358, %368 : vector<1x32xf32>
    %379 = arith.addf %377, %378 : vector<1x32xf32>
    %380 = math.tanh %379 : vector<1x32xf32>
    %381 = arith.mulf %376, %380 : vector<1x32xf32>
    %382 = tpu.iota {dimensions = array<i32: 1>} : vector<1x4xi32>
    %c3_i32 = arith.constant 3 : i32
    %383 = vector.broadcast %c3_i32 : i32 to vector<1x4xi32>
    %384 = arith.cmpi eq, %382, %383 : vector<1x4xi32>
    %385 = arith.extui %384 : vector<1x4xi1> to vector<1x4xi32>
    %386 = arith.sitofp %385 : vector<1x4xi32> to vector<1x4xf32>
    %cst_158 = arith.constant dense<0.000000e+00> : vector<1x128xf32>
    %387 = tpu.matmul %386, %256, %cst_158 {dimension_numbers = #tpu.dot_dimension_numbers<[1], [0], [0], [1], [0, 0, 1, 1], [], []>} : vector<1x4xf32>, vector<4x128xf32>, vector<1x128xf32> -> vector<1x128xf32>
    %cst_159 = arith.constant dense<0.000000e+00> : vector<1x128xf32>
    %388 = tpu.matmul %381, %262, %cst_159 {dimension_numbers = #tpu.dot_dimension_numbers<[1], [0], [0], [1], [0, 0, 1, 1], [], []>} : vector<1x32xf32>, vector<32x128xf32>, vector<1x128xf32> -> vector<1x128xf32>
    %389 = arith.addf %387, %388 : vector<1x128xf32>
    %390 = vector.extract_strided_slice %389 {offsets = [0, 0], sizes = [1, 32], strides = [1, 1]} : vector<1x128xf32> to vector<1x32xf32>
    %cst_160 = arith.constant 0.000000e+00 : f32
    %391 = vector.broadcast %cst_160 : f32 to vector<1x32xf32>
    %392 = arith.subf %391, %390 : vector<1x32xf32>
    %393 = math.exp %392 : vector<1x32xf32>
    %cst_161 = arith.constant 1.000000e+00 : f32
    %394 = vector.broadcast %cst_161 : f32 to vector<1x32xf32>
    %395 = arith.addf %394, %393 : vector<1x32xf32>
    %cst_162 = arith.constant 1.000000e+00 : f32
    %396 = vector.broadcast %cst_162 : f32 to vector<1x32xf32>
    %397 = arith.divf %396, %395 : vector<1x32xf32>
    %398 = vector.extract_strided_slice %389 {offsets = [0, 32], sizes = [1, 32], strides = [1, 1]} : vector<1x128xf32> to vector<1x32xf32>
    %cst_163 = arith.constant 0.000000e+00 : f32
    %399 = vector.broadcast %cst_163 : f32 to vector<1x32xf32>
    %400 = arith.subf %399, %398 : vector<1x32xf32>
    %401 = math.exp %400 : vector<1x32xf32>
    %cst_164 = arith.constant 1.000000e+00 : f32
    %402 = vector.broadcast %cst_164 : f32 to vector<1x32xf32>
    %403 = arith.addf %402, %401 : vector<1x32xf32>
    %cst_165 = arith.constant 1.000000e+00 : f32
    %404 = vector.broadcast %cst_165 : f32 to vector<1x32xf32>
    %405 = arith.divf %404, %403 : vector<1x32xf32>
    %406 = vector.extract_strided_slice %389 {offsets = [0, 64], sizes = [1, 32], strides = [1, 1]} : vector<1x128xf32> to vector<1x32xf32>
    %407 = math.tanh %406 : vector<1x32xf32>
    %408 = vector.extract_strided_slice %389 {offsets = [0, 96], sizes = [1, 32], strides = [1, 1]} : vector<1x128xf32> to vector<1x32xf32>
    %cst_166 = arith.constant 0.000000e+00 : f32
    %409 = vector.broadcast %cst_166 : f32 to vector<1x32xf32>
    %410 = arith.subf %409, %408 : vector<1x32xf32>
    %411 = math.exp %410 : vector<1x32xf32>
    %cst_167 = arith.constant 1.000000e+00 : f32
    %412 = vector.broadcast %cst_167 : f32 to vector<1x32xf32>
    %413 = arith.addf %412, %411 : vector<1x32xf32>
    %cst_168 = arith.constant 1.000000e+00 : f32
    %414 = vector.broadcast %cst_168 : f32 to vector<1x32xf32>
    %415 = arith.divf %414, %413 : vector<1x32xf32>
    %416 = arith.mulf %405, %379 : vector<1x32xf32>
    %417 = arith.mulf %397, %407 : vector<1x32xf32>
    %418 = arith.addf %416, %417 : vector<1x32xf32>
    %419 = math.tanh %418 : vector<1x32xf32>
    %420 = arith.mulf %415, %419 : vector<1x32xf32>
    %421 = tpu.iota {dimensions = array<i32: 1>} : vector<1x4xi32>
    %c3_i32_169 = arith.constant 3 : i32
    %422 = vector.broadcast %c3_i32_169 : i32 to vector<1x4xi32>
    %423 = arith.cmpi eq, %421, %422 : vector<1x4xi32>
    %424 = arith.extui %423 : vector<1x4xi1> to vector<1x4xi32>
    %425 = arith.sitofp %424 : vector<1x4xi32> to vector<1x4xf32>
    %cst_170 = arith.constant dense<0.000000e+00> : vector<1x128xf32>
    %426 = tpu.matmul %425, %261, %cst_170 {dimension_numbers = #tpu.dot_dimension_numbers<[1], [0], [0], [1], [0, 0, 1, 1], [], []>} : vector<1x4xf32>, vector<4x128xf32>, vector<1x128xf32> -> vector<1x128xf32>
    %cst_171 = arith.constant dense<0.000000e+00> : vector<1x128xf32>
    %427 = tpu.matmul %264, %263, %cst_171 {dimension_numbers = #tpu.dot_dimension_numbers<[1], [0], [0], [1], [0, 0, 1, 1], [], []>} : vector<1x32xf32>, vector<32x128xf32>, vector<1x128xf32> -> vector<1x128xf32>
    %428 = arith.addf %426, %427 : vector<1x128xf32>
    %429 = vector.extract_strided_slice %428 {offsets = [0, 0], sizes = [1, 32], strides = [1, 1]} : vector<1x128xf32> to vector<1x32xf32>
    %cst_172 = arith.constant 0.000000e+00 : f32
    %430 = vector.broadcast %cst_172 : f32 to vector<1x32xf32>
    %431 = arith.subf %430, %429 : vector<1x32xf32>
    %432 = math.exp %431 : vector<1x32xf32>
    %cst_173 = arith.constant 1.000000e+00 : f32
    %433 = vector.broadcast %cst_173 : f32 to vector<1x32xf32>
    %434 = arith.addf %433, %432 : vector<1x32xf32>
    %cst_174 = arith.constant 1.000000e+00 : f32
    %435 = vector.broadcast %cst_174 : f32 to vector<1x32xf32>
    %436 = arith.divf %435, %434 : vector<1x32xf32>
    %437 = vector.extract_strided_slice %428 {offsets = [0, 32], sizes = [1, 32], strides = [1, 1]} : vector<1x128xf32> to vector<1x32xf32>
    %cst_175 = arith.constant 0.000000e+00 : f32
    %438 = vector.broadcast %cst_175 : f32 to vector<1x32xf32>
    %439 = arith.subf %438, %437 : vector<1x32xf32>
    %440 = math.exp %439 : vector<1x32xf32>
    %cst_176 = arith.constant 1.000000e+00 : f32
    %441 = vector.broadcast %cst_176 : f32 to vector<1x32xf32>
    %442 = arith.addf %441, %440 : vector<1x32xf32>
    %cst_177 = arith.constant 1.000000e+00 : f32
    %443 = vector.broadcast %cst_177 : f32 to vector<1x32xf32>
    %444 = arith.divf %443, %442 : vector<1x32xf32>
    %445 = vector.extract_strided_slice %428 {offsets = [0, 64], sizes = [1, 32], strides = [1, 1]} : vector<1x128xf32> to vector<1x32xf32>
    %446 = math.tanh %445 : vector<1x32xf32>
    %447 = vector.extract_strided_slice %428 {offsets = [0, 96], sizes = [1, 32], strides = [1, 1]} : vector<1x128xf32> to vector<1x32xf32>
    %cst_178 = arith.constant 0.000000e+00 : f32
    %448 = vector.broadcast %cst_178 : f32 to vector<1x32xf32>
    %449 = arith.subf %448, %447 : vector<1x32xf32>
    %450 = math.exp %449 : vector<1x32xf32>
    %cst_179 = arith.constant 1.000000e+00 : f32
    %451 = vector.broadcast %cst_179 : f32 to vector<1x32xf32>
    %452 = arith.addf %451, %450 : vector<1x32xf32>
    %cst_180 = arith.constant 1.000000e+00 : f32
    %453 = vector.broadcast %cst_180 : f32 to vector<1x32xf32>
    %454 = arith.divf %453, %452 : vector<1x32xf32>
    %455 = arith.mulf %444, %264 : vector<1x32xf32>
    %456 = arith.mulf %436, %446 : vector<1x32xf32>
    %457 = arith.addf %455, %456 : vector<1x32xf32>
    %458 = math.tanh %457 : vector<1x32xf32>
    %459 = arith.mulf %454, %458 : vector<1x32xf32>
    %460 = tpu.iota {dimensions = array<i32: 1>} : vector<1x4xi32>
    %c2_i32_181 = arith.constant 2 : i32
    %461 = vector.broadcast %c2_i32_181 : i32 to vector<1x4xi32>
    %462 = arith.cmpi eq, %460, %461 : vector<1x4xi32>
    %463 = arith.extui %462 : vector<1x4xi1> to vector<1x4xi32>
    %464 = arith.sitofp %463 : vector<1x4xi32> to vector<1x4xf32>
    %cst_182 = arith.constant dense<0.000000e+00> : vector<1x128xf32>
    %465 = tpu.matmul %464, %261, %cst_182 {dimension_numbers = #tpu.dot_dimension_numbers<[1], [0], [0], [1], [0, 0, 1, 1], [], []>} : vector<1x4xf32>, vector<4x128xf32>, vector<1x128xf32> -> vector<1x128xf32>
    %cst_183 = arith.constant dense<0.000000e+00> : vector<1x128xf32>
    %466 = tpu.matmul %459, %263, %cst_183 {dimension_numbers = #tpu.dot_dimension_numbers<[1], [0], [0], [1], [0, 0, 1, 1], [], []>} : vector<1x32xf32>, vector<32x128xf32>, vector<1x128xf32> -> vector<1x128xf32>
    %467 = arith.addf %465, %466 : vector<1x128xf32>
    %468 = vector.extract_strided_slice %467 {offsets = [0, 0], sizes = [1, 32], strides = [1, 1]} : vector<1x128xf32> to vector<1x32xf32>
    %cst_184 = arith.constant 0.000000e+00 : f32
    %469 = vector.broadcast %cst_184 : f32 to vector<1x32xf32>
    %470 = arith.subf %469, %468 : vector<1x32xf32>
    %471 = math.exp %470 : vector<1x32xf32>
    %cst_185 = arith.constant 1.000000e+00 : f32
    %472 = vector.broadcast %cst_185 : f32 to vector<1x32xf32>
    %473 = arith.addf %472, %471 : vector<1x32xf32>
    %cst_186 = arith.constant 1.000000e+00 : f32
    %474 = vector.broadcast %cst_186 : f32 to vector<1x32xf32>
    %475 = arith.divf %474, %473 : vector<1x32xf32>
    %476 = vector.extract_strided_slice %467 {offsets = [0, 32], sizes = [1, 32], strides = [1, 1]} : vector<1x128xf32> to vector<1x32xf32>
    %cst_187 = arith.constant 0.000000e+00 : f32
    %477 = vector.broadcast %cst_187 : f32 to vector<1x32xf32>
    %478 = arith.subf %477, %476 : vector<1x32xf32>
    %479 = math.exp %478 : vector<1x32xf32>
    %cst_188 = arith.constant 1.000000e+00 : f32
    %480 = vector.broadcast %cst_188 : f32 to vector<1x32xf32>
    %481 = arith.addf %480, %479 : vector<1x32xf32>
    %cst_189 = arith.constant 1.000000e+00 : f32
    %482 = vector.broadcast %cst_189 : f32 to vector<1x32xf32>
    %483 = arith.divf %482, %481 : vector<1x32xf32>
    %484 = vector.extract_strided_slice %467 {offsets = [0, 64], sizes = [1, 32], strides = [1, 1]} : vector<1x128xf32> to vector<1x32xf32>
    %485 = math.tanh %484 : vector<1x32xf32>
    %486 = vector.extract_strided_slice %467 {offsets = [0, 96], sizes = [1, 32], strides = [1, 1]} : vector<1x128xf32> to vector<1x32xf32>
    %cst_190 = arith.constant 0.000000e+00 : f32
    %487 = vector.broadcast %cst_190 : f32 to vector<1x32xf32>
    %488 = arith.subf %487, %486 : vector<1x32xf32>
    %489 = math.exp %488 : vector<1x32xf32>
    %cst_191 = arith.constant 1.000000e+00 : f32
    %490 = vector.broadcast %cst_191 : f32 to vector<1x32xf32>
    %491 = arith.addf %490, %489 : vector<1x32xf32>
    %cst_192 = arith.constant 1.000000e+00 : f32
    %492 = vector.broadcast %cst_192 : f32 to vector<1x32xf32>
    %493 = arith.divf %492, %491 : vector<1x32xf32>
    %494 = arith.mulf %483, %457 : vector<1x32xf32>
    %495 = arith.mulf %475, %485 : vector<1x32xf32>
    %496 = arith.addf %494, %495 : vector<1x32xf32>
    %497 = math.tanh %496 : vector<1x32xf32>
    %498 = arith.mulf %493, %497 : vector<1x32xf32>
    %499 = tpu.iota {dimensions = array<i32: 1>} : vector<1x4xi32>
    %c1_i32_193 = arith.constant 1 : i32
    %500 = vector.broadcast %c1_i32_193 : i32 to vector<1x4xi32>
    %501 = arith.cmpi eq, %499, %500 : vector<1x4xi32>
    %502 = arith.extui %501 : vector<1x4xi1> to vector<1x4xi32>
    %503 = arith.sitofp %502 : vector<1x4xi32> to vector<1x4xf32>
    %cst_194 = arith.constant dense<0.000000e+00> : vector<1x128xf32>
    %504 = tpu.matmul %503, %261, %cst_194 {dimension_numbers = #tpu.dot_dimension_numbers<[1], [0], [0], [1], [0, 0, 1, 1], [], []>} : vector<1x4xf32>, vector<4x128xf32>, vector<1x128xf32> -> vector<1x128xf32>
    %cst_195 = arith.constant dense<0.000000e+00> : vector<1x128xf32>
    %505 = tpu.matmul %498, %263, %cst_195 {dimension_numbers = #tpu.dot_dimension_numbers<[1], [0], [0], [1], [0, 0, 1, 1], [], []>} : vector<1x32xf32>, vector<32x128xf32>, vector<1x128xf32> -> vector<1x128xf32>
    %506 = arith.addf %504, %505 : vector<1x128xf32>
    %507 = vector.extract_strided_slice %506 {offsets = [0, 0], sizes = [1, 32], strides = [1, 1]} : vector<1x128xf32> to vector<1x32xf32>
    %cst_196 = arith.constant 0.000000e+00 : f32
    %508 = vector.broadcast %cst_196 : f32 to vector<1x32xf32>
    %509 = arith.subf %508, %507 : vector<1x32xf32>
    %510 = math.exp %509 : vector<1x32xf32>
    %cst_197 = arith.constant 1.000000e+00 : f32
    %511 = vector.broadcast %cst_197 : f32 to vector<1x32xf32>
    %512 = arith.addf %511, %510 : vector<1x32xf32>
    %cst_198 = arith.constant 1.000000e+00 : f32
    %513 = vector.broadcast %cst_198 : f32 to vector<1x32xf32>
    %514 = arith.divf %513, %512 : vector<1x32xf32>
    %515 = vector.extract_strided_slice %506 {offsets = [0, 32], sizes = [1, 32], strides = [1, 1]} : vector<1x128xf32> to vector<1x32xf32>
    %cst_199 = arith.constant 0.000000e+00 : f32
    %516 = vector.broadcast %cst_199 : f32 to vector<1x32xf32>
    %517 = arith.subf %516, %515 : vector<1x32xf32>
    %518 = math.exp %517 : vector<1x32xf32>
    %cst_200 = arith.constant 1.000000e+00 : f32
    %519 = vector.broadcast %cst_200 : f32 to vector<1x32xf32>
    %520 = arith.addf %519, %518 : vector<1x32xf32>
    %cst_201 = arith.constant 1.000000e+00 : f32
    %521 = vector.broadcast %cst_201 : f32 to vector<1x32xf32>
    %522 = arith.divf %521, %520 : vector<1x32xf32>
    %523 = vector.extract_strided_slice %506 {offsets = [0, 64], sizes = [1, 32], strides = [1, 1]} : vector<1x128xf32> to vector<1x32xf32>
    %524 = math.tanh %523 : vector<1x32xf32>
    %525 = vector.extract_strided_slice %506 {offsets = [0, 96], sizes = [1, 32], strides = [1, 1]} : vector<1x128xf32> to vector<1x32xf32>
    %cst_202 = arith.constant 0.000000e+00 : f32
    %526 = vector.broadcast %cst_202 : f32 to vector<1x32xf32>
    %527 = arith.subf %526, %525 : vector<1x32xf32>
    %528 = math.exp %527 : vector<1x32xf32>
    %cst_203 = arith.constant 1.000000e+00 : f32
    %529 = vector.broadcast %cst_203 : f32 to vector<1x32xf32>
    %530 = arith.addf %529, %528 : vector<1x32xf32>
    %cst_204 = arith.constant 1.000000e+00 : f32
    %531 = vector.broadcast %cst_204 : f32 to vector<1x32xf32>
    %532 = arith.divf %531, %530 : vector<1x32xf32>
    %533 = arith.mulf %522, %496 : vector<1x32xf32>
    %534 = arith.mulf %514, %524 : vector<1x32xf32>
    %535 = arith.addf %533, %534 : vector<1x32xf32>
    %536 = math.tanh %535 : vector<1x32xf32>
    %537 = arith.mulf %532, %536 : vector<1x32xf32>
    %538 = tpu.iota {dimensions = array<i32: 1>} : vector<1x4xi32>
    %c0_i32_205 = arith.constant 0 : i32
    %539 = vector.broadcast %c0_i32_205 : i32 to vector<1x4xi32>
    %540 = arith.cmpi eq, %538, %539 : vector<1x4xi32>
    %541 = arith.extui %540 : vector<1x4xi1> to vector<1x4xi32>
    %542 = arith.sitofp %541 : vector<1x4xi32> to vector<1x4xf32>
    %cst_206 = arith.constant dense<0.000000e+00> : vector<1x128xf32>
    %543 = tpu.matmul %542, %261, %cst_206 {dimension_numbers = #tpu.dot_dimension_numbers<[1], [0], [0], [1], [0, 0, 1, 1], [], []>} : vector<1x4xf32>, vector<4x128xf32>, vector<1x128xf32> -> vector<1x128xf32>
    %cst_207 = arith.constant dense<0.000000e+00> : vector<1x128xf32>
    %544 = tpu.matmul %537, %263, %cst_207 {dimension_numbers = #tpu.dot_dimension_numbers<[1], [0], [0], [1], [0, 0, 1, 1], [], []>} : vector<1x32xf32>, vector<32x128xf32>, vector<1x128xf32> -> vector<1x128xf32>
    %545 = arith.addf %543, %544 : vector<1x128xf32>
    %546 = vector.extract_strided_slice %545 {offsets = [0, 0], sizes = [1, 32], strides = [1, 1]} : vector<1x128xf32> to vector<1x32xf32>
    %cst_208 = arith.constant 0.000000e+00 : f32
    %547 = vector.broadcast %cst_208 : f32 to vector<1x32xf32>
    %548 = arith.subf %547, %546 : vector<1x32xf32>
    %549 = math.exp %548 : vector<1x32xf32>
    %cst_209 = arith.constant 1.000000e+00 : f32
    %550 = vector.broadcast %cst_209 : f32 to vector<1x32xf32>
    %551 = arith.addf %550, %549 : vector<1x32xf32>
    %cst_210 = arith.constant 1.000000e+00 : f32
    %552 = vector.broadcast %cst_210 : f32 to vector<1x32xf32>
    %553 = arith.divf %552, %551 : vector<1x32xf32>
    %554 = vector.extract_strided_slice %545 {offsets = [0, 32], sizes = [1, 32], strides = [1, 1]} : vector<1x128xf32> to vector<1x32xf32>
    %cst_211 = arith.constant 0.000000e+00 : f32
    %555 = vector.broadcast %cst_211 : f32 to vector<1x32xf32>
    %556 = arith.subf %555, %554 : vector<1x32xf32>
    %557 = math.exp %556 : vector<1x32xf32>
    %cst_212 = arith.constant 1.000000e+00 : f32
    %558 = vector.broadcast %cst_212 : f32 to vector<1x32xf32>
    %559 = arith.addf %558, %557 : vector<1x32xf32>
    %cst_213 = arith.constant 1.000000e+00 : f32
    %560 = vector.broadcast %cst_213 : f32 to vector<1x32xf32>
    %561 = arith.divf %560, %559 : vector<1x32xf32>
    %562 = vector.extract_strided_slice %545 {offsets = [0, 64], sizes = [1, 32], strides = [1, 1]} : vector<1x128xf32> to vector<1x32xf32>
    %563 = math.tanh %562 : vector<1x32xf32>
    %564 = vector.extract_strided_slice %545 {offsets = [0, 96], sizes = [1, 32], strides = [1, 1]} : vector<1x128xf32> to vector<1x32xf32>
    %cst_214 = arith.constant 0.000000e+00 : f32
    %565 = vector.broadcast %cst_214 : f32 to vector<1x32xf32>
    %566 = arith.subf %565, %564 : vector<1x32xf32>
    %567 = math.exp %566 : vector<1x32xf32>
    %cst_215 = arith.constant 1.000000e+00 : f32
    %568 = vector.broadcast %cst_215 : f32 to vector<1x32xf32>
    %569 = arith.addf %568, %567 : vector<1x32xf32>
    %cst_216 = arith.constant 1.000000e+00 : f32
    %570 = vector.broadcast %cst_216 : f32 to vector<1x32xf32>
    %571 = arith.divf %570, %569 : vector<1x32xf32>
    %572 = arith.mulf %561, %535 : vector<1x32xf32>
    %573 = arith.mulf %553, %563 : vector<1x32xf32>
    %574 = arith.addf %572, %573 : vector<1x32xf32>
    %575 = math.tanh %574 : vector<1x32xf32>
    %576 = arith.mulf %571, %575 : vector<1x32xf32>
    %577 = tpu.concatenate %303, %576 in 1 : vector<1x32xf32>, vector<1x32xf32> -> vector<1x64xf32>
    %578 = tpu.concatenate %342, %537 in 1 : vector<1x32xf32>, vector<1x32xf32> -> vector<1x64xf32>
    %579 = tpu.concatenate %381, %498 in 1 : vector<1x32xf32>, vector<1x32xf32> -> vector<1x64xf32>
    %580 = tpu.concatenate %420, %459 in 1 : vector<1x32xf32>, vector<1x32xf32> -> vector<1x64xf32>
    %581 = tpu.concatenate %577, %578, %579, %580 in 0 : vector<1x64xf32>, vector<1x64xf32>, vector<1x64xf32>, vector<1x64xf32> -> vector<4x64xf32>
    %cst_217 = arith.constant dense<0.000000e+00> : vector<64xf32>
    %582 = vector.multi_reduction <add>, %581, %cst_217 [0] : vector<4x64xf32> to vector<64xf32>
    %583 = vector.shape_cast %582 : vector<64xf32> to vector<1x64xf32>
    %584 = vector.broadcast %583 : vector<1x64xf32> to vector<4x64xf32>
    %585 = arith.subf %584, %581 : vector<4x64xf32>
    %cst_218 = arith.constant 0.333333343 : f32
    %586 = vector.broadcast %cst_218 : f32 to vector<4x64xf32>
    %587 = arith.mulf %585, %586 : vector<4x64xf32>
    %588 = arith.subf %581, %587 : vector<4x64xf32>
    %c0_219 = arith.constant 0 : index
    %c0_220 = arith.constant 0 : index
    %589 = vector.load %arg36[%c0_219, %c0_220] : memref<64x64xf32, #tpu.memory_space<vmem>>, vector<64x64xf32>
    %cst_221 = arith.constant dense<0.000000e+00> : vector<4x64xf32>
    %590 = tpu.matmul %588, %589, %cst_221 {dimension_numbers = #tpu.dot_dimension_numbers<[1], [0], [0], [1], [0, 0, 1, 1], [], []>} : vector<4x64xf32>, vector<64x64xf32>, vector<4x64xf32> -> vector<4x64xf32>
    %c0_222 = arith.constant 0 : index
    %c0_223 = arith.constant 0 : index
    %591 = vector.load %arg37[%c0_222, %c0_223] : memref<1x64xf32, #tpu.memory_space<vmem>>, vector<1x64xf32>
    %592 = vector.broadcast %591 : vector<1x64xf32> to vector<4x64xf32>
    %593 = arith.addf %590, %592 : vector<4x64xf32>
    %594 = arith.addf %593, %581 : vector<4x64xf32>
    %595 = arith.subf %594, %587 : vector<4x64xf32>
    %c0_224 = arith.constant 0 : index
    %c0_225 = arith.constant 0 : index
    %596 = vector.load %arg36[%c0_224, %c0_225] : memref<64x64xf32, #tpu.memory_space<vmem>>, vector<64x64xf32>
    %cst_226 = arith.constant dense<0.000000e+00> : vector<4x64xf32>
    %597 = tpu.matmul %595, %596, %cst_226 {dimension_numbers = #tpu.dot_dimension_numbers<[1], [0], [0], [1], [0, 0, 1, 1], [], []>} : vector<4x64xf32>, vector<64x64xf32>, vector<4x64xf32> -> vector<4x64xf32>
    %c0_227 = arith.constant 0 : index
    %c0_228 = arith.constant 0 : index
    %598 = vector.load %arg37[%c0_227, %c0_228] : memref<1x64xf32, #tpu.memory_space<vmem>>, vector<1x64xf32>
    %599 = vector.broadcast %598 : vector<1x64xf32> to vector<4x64xf32>
    %600 = arith.addf %597, %599 : vector<4x64xf32>
    %601 = arith.addf %600, %594 : vector<4x64xf32>
    %c0_229 = arith.constant 0 : index
    %c0_230 = arith.constant 0 : index
    %602 = vector.load %arg38[%c0_229, %c0_230] : memref<64x1xf32, #tpu.memory_space<vmem>>, vector<64x1xf32>
    %cst_231 = arith.constant dense<0.000000e+00> : vector<4x1xf32>
    %603 = tpu.matmul %601, %602, %cst_231 {dimension_numbers = #tpu.dot_dimension_numbers<[1], [0], [0], [1], [0, 0, 1, 1], [], []>} : vector<4x64xf32>, vector<64x1xf32>, vector<4x1xf32> -> vector<4x1xf32>
    %c0_232 = arith.constant 0 : index
    %c0_233 = arith.constant 0 : index
    %604 = vector.load %arg39[%c0_232, %c0_233] : memref<1x1xf32, #tpu.memory_space<vmem>>, vector<1x1xf32>
    %605 = vector.broadcast %604 : vector<1x1xf32> to vector<4x1xf32>
    %606 = arith.addf %603, %605 : vector<4x1xf32>
    %cst_234 = arith.constant 0.000000e+00 : f32
    %607 = vector.broadcast %cst_234 : f32 to vector<4x1xf32>
    %608 = arith.subf %607, %606 : vector<4x1xf32>
    %609 = math.exp %608 : vector<4x1xf32>
    %cst_235 = arith.constant 1.000000e+00 : f32
    %610 = vector.broadcast %cst_235 : f32 to vector<4x1xf32>
    %611 = arith.addf %610, %609 : vector<4x1xf32>
    %cst_236 = arith.constant 1.000000e+00 : f32
    %612 = vector.broadcast %cst_236 : f32 to vector<4x1xf32>
    %613 = arith.divf %612, %611 : vector<4x1xf32>
    %c0_237 = arith.constant 0 : index
    %c0_238 = arith.constant 0 : index
    %614 = vector.load %arg40[%c0_237, %c0_238] : memref<4x1xf32, #tpu.memory_space<vmem>>, vector<4x1xf32>
    tpu.vector_store %arg40[%c0_237, %c0_238], %613 {strides = array<i32>} : memref<4x1xf32, #tpu.memory_space<vmem>>, vector<4x1xf32>,
    return
  }
}

</mosaic_0001>

<bundles_post_ra>
// kernel: eq.29
= control target key start
LH: loop header
LB: loop body
LE: loop exit
PB: predicated region body
PF: predicated region fallthrough
CT: control target
= control target key end

     0   :  { %vm7_vm0 = vcmask 261120   ;;  %s37_s8 = smov 32   ;;  %s38_s9 = smov 64   ;;  %vm13_vm1 = vcmask 1048320   ;;  %vm19_vm2 = vcmask 785920   ;;  %vm25_vm3 = vcmask 523520   ;;  %s55_s0 = inlined_call_operand.vmem [shape: s32[4,32], index: 0, kind: input, shape index: {}]   ;;  %s56_s1 = inlined_call_operand.vmem [shape: s32[128], index: 1, kind: output, shape index: {}]  }
   0x1   :  { %v4_v0 = vld [vmem:[%s55_s0] sm:$0xf]  ;;  %s36_s0 = smov 96  }
   0x2   :  { %5 = vst [vmem:[#allocation1] sm:$0xf] %v4_v0 }
   0x9   :  { %v10_v1 = vld [vmem:[#allocation1 + $0x3] sm:$0x1]   ;;  %v22_v2 = vld [vmem:[#allocation1 + $0x1] sm:$0x1]   ;;  %v6_v3 = vld [vmem:[#allocation1] sm:$0x1]  }
   0xa   :  { %11 = vrot.lane.b32.xlu0 %v10_v1, %s36_s0  ;;  %23 = vrot.lane.b32.xlu1 %v22_v2, %s37_s8  ;;  %v16_v4 = vld [vmem:[#allocation1 + $0x2] sm:$0x1]   ;;  %8 = vst.msk [vmem:[#allocation0] sm:$0x1] %vm7_vm0, %v6_v3  }
   0xe   :  { %17 = vrot.lane.b32.xlu0 %v16_v4, %s38_s9 }
  0x7c   :  { %v12_v5 = vpop.permute.xlu0 %11   ;;  %v24_v6 = vpop.permute.xlu1 %23  }
  0x7d   :  { %14 = vst.msk [vmem:[#allocation0] sm:$0x1] %vm13_vm1, %v12_v5  }
  0x80   :  { %v18_v7 = vpop.permute.xlu0 %17  }
  0x81   :  { %20 = vst.msk [vmem:[#allocation0] sm:$0x1] %vm19_vm2, %v18_v7  }
  0x82   :  { %26 = vst.msk [vmem:[#allocation0] sm:$0x1] %vm25_vm3, %v24_v6  }
  0x89   :  { %v30_v8 = vld [vmem:[#allocation0] sm:$0x1] }
  0x8a   :  { %32 = vst [vmem:[%s56_s1] sm:$0x1] %v30_v8 }

</bundles_post_ra>
